<compile_context>
chip_gen: v6e
topology: v6e:2x2x1
jax: 0.10.0
libtpu: 0.0.40
codegen_flags: <defaults>
</compile_context>

<pallas_src>
import functools

import jax
import jax.numpy as jnp
from jax.experimental import pallas as pl
from jax.experimental.pallas import tpu as pltpu

EPS = 1e-5  # nn.InstanceNorm2d default eps


def _aii_kernel(h_ref, za_ref, lam_ref, gbid_ref,
                w12_ref, b12_ref, w2h_ref,
                out_ref, *, c_h):
    # h_ref:    (Bt, c_h,    S)   za_ref: (Bt, c_attr, S)
    # lam_ref:  (Bt, 1, S)   = w2h[:, c_h:] @ lamb + b2h   (precomputed)
    # gbid_ref: (Bt, 2*c_h, 1) = [fc1(z_id); fc2(z_id)]    (precomputed)
    # w12_ref:  (2*c_h, c_attr)  b12_ref: (2*c_h, 1)  w2h_ref: (c_h, 1)
    bt = h_ref.shape[0]

    h_in = h_ref[...]                                        # (Bt, c_h, S) f32

    # ---- InstanceNorm2d (no affine), biased variance over spatial dim ----
    mean = jnp.mean(h_in, axis=-1, keepdims=True)
    diff = h_in - mean
    var = jnp.mean(diff * diff, axis=-1, keepdims=True)
    h = diff * jax.lax.rsqrt(var + EPS)                      # (Bt, c_h, S)

    # ---- gate M = sigmoid(w2h_h . h + lam_logit) ----
    # VPU multiply + channel (sublane) reduce instead of a degenerate
    # (1, c_h) @ (c_h, S) MXU matmul; lambda part + bias precomputed.
    m_logit = jnp.sum(w2h_ref[...] * h, axis=1, keepdims=True) + lam_ref[...]
    M = jax.nn.sigmoid(m_logit)                              # (Bt, 1, S)

    w12 = w12_ref[...]                                       # (2*c_h, c_attr)
    b12 = b12_ref[...]                                       # (2*c_h, 1)
    gbid = gbid_ref[...]                                     # (Bt, 2*c_h, 1)

    for b in range(bt):  # static, small unrolled batch loop
        # stacked conv1/conv2: one matmul, split with static sublane slices
        gb = jnp.dot(w12, za_ref[b],
                     preferred_element_type=jnp.float32) + b12   # (2*c_h, S)
        gamma_attr = gb[:c_h]
        beta_attr = gb[c_h:]
        gid = gbid[b, :c_h]                                  # (c_h, 1)
        bid = gbid[b, c_h:]
        hb = h[b]
        A = gamma_attr * hb + beta_attr                      # (c_h, S)
        I = gid * hb + bid                                   # (c_h, S)
        out_ref[b] = (A + M[b] * (I - A)).astype(out_ref.dtype)


def _pick_bt(B, per_elem_bytes, vmem_budget=24 << 20):
    """Largest divisor of B fitting the VMEM budget, keeping >=2 grid steps."""
    max_bt = max(1, vmem_budget // max(per_elem_bytes, 1))
    if B >= 2:
        max_bt = min(max_bt, max(1, B // 2))  # v7x dual TensorCore: >=2 steps
    bt = 1
    for d in range(1, B + 1):
        if B % d == 0 and d <= max_bt:
            bt = d
    return bt


def aii_layer_lambda(h_in, z_attr, z_id, lamb, params, *, bt=None):
    """h_in: (B, c_h, H, W); z_attr: (B, c_attr, H, W); z_id: (B, c_id);
    lamb: (B, c_lamb, H, W). Returns (B, c_h, H, W), float32."""
    B, c_h, H, W = h_in.shape
    c_attr = z_attr.shape[1]
    c_lamb = lamb.shape[1]
    S = H * W

    (w1, b1, w2, b2, wf1, bf1, wf2, bf2, w2h, b2h) = params

    # ---- wrapper-side precompute (hoisted out of the kernel) ----
    # identity branch: two well-shaped (B, c_id) @ (c_id, c_h) matmuls, packed
    # into one small (B, 2*c_h, 1) kernel input.
    gamma_id = (z_id @ wf1.T + bf1.reshape(1, -1)).astype(jnp.float32)
    beta_id = (z_id @ wf2.T + bf2.reshape(1, -1)).astype(jnp.float32)
    gbid = jnp.concatenate([gamma_id, beta_id], axis=1).reshape(B, 2 * c_h, 1)

    # lambda contribution to the gate logit, plus conv_2h bias: (B, 1, S)
    lam3 = lamb.reshape(B, c_lamb, S)
    lam_logit = (jnp.einsum('oc,bcs->bos', w2h[:, c_h:], lam3)
                 + b2h.reshape(1, 1, 1)).astype(jnp.float32)

    # stacked conv1/conv2 weights and biases
    w12 = jnp.concatenate([w1, w2], axis=0).astype(jnp.float32)   # (2*c_h, c_attr)
    b12 = jnp.concatenate([b1.reshape(-1, 1), b2.reshape(-1, 1)],
                          axis=0).astype(jnp.float32)             # (2*c_h, 1)
    w2h_h = w2h[:, :c_h].reshape(c_h, 1).astype(jnp.float32)      # (c_h, 1)

    h3 = h_in.reshape(B, c_h, S).astype(jnp.float32)
    za3 = z_attr.reshape(B, c_attr, S).astype(jnp.float32)

    if bt is None:
        # per-batch-element f32 footprint, double buffered (in + out)
        per_elem = 4 * (2 * c_h * S + c_attr * S + S + 2 * c_h) * 2
        bt = _pick_bt(B, per_elem)
    assert B % bt == 0, f"bt={bt} must divide B={B}"

    batch_block = lambda c, last: pl.BlockSpec((bt, c, last), lambda b: (b, 0, 0))
    full = lambda arr: pl.BlockSpec(arr.shape, lambda b: tuple(0 for _ in arr.shape))

    # TODO(synk): for production AII sizes (c_h up to ~1024, S >= 4096) add an
    # S-tiled path with a separate stats pass so the per-step block stays under
    # v7x's smaller VMEM; at these shapes the whole (Bt, c_h, S) slab fits.
    out = pl.pallas_call(
        functools.partial(_aii_kernel, c_h=c_h),
        out_shape=jax.ShapeDtypeStruct((B, c_h, S), jnp.float32),
        grid_spec=pltpu.PrefetchScalarGridSpec(
            num_scalar_prefetch=0,
            grid=(B // bt,),
            in_specs=[
                batch_block(c_h, S),       # h_in
                batch_block(c_attr, S),    # z_attr
                batch_block(1, S),         # lam_logit (precomputed)
                batch_block(2 * c_h, 1),   # packed gamma_id/beta_id (precomputed)
                full(w12), full(b12), full(w2h_h),
            ],
            out_specs=batch_block(c_h, S),
        ),
        compiler_params=pltpu.CompilerParams(
            dimension_semantics=("parallel",)),
    )(h3, za3, lam_logit, gbid, w12, b12, w2h_h)

    return out.reshape(B, c_h, H, W)


def reference(h_in, z_attr, z_id, lamb, params):
    """Pure-JAX reference of the PyTorch forward (NCHW semantics)."""
    (w1, b1, w2, b2, wf1, bf1, wf2, bf2, w2h, b2h) = params
    mean = jnp.mean(h_in, axis=(2, 3), keepdims=True)
    var = jnp.mean((h_in - mean) ** 2, axis=(2, 3), keepdims=True)
    h = (h_in - mean) / jnp.sqrt(var + EPS)

    hl = jnp.concatenate([h, lamb], axis=1)
    m_logit = jnp.einsum('oc,bchw->bohw', w2h, hl) + b2h.reshape(1, 1, 1, 1)
    M = jax.nn.sigmoid(m_logit)

    gamma_attr = jnp.einsum('oc,bchw->bohw', w1, z_attr) + b1.reshape(1, -1, 1, 1)
    beta_attr = jnp.einsum('oc,bchw->bohw', w2, z_attr) + b2.reshape(1, -1, 1, 1)
    A = gamma_attr * h + beta_attr

    gamma_id = (z_id @ wf1.T + bf1.reshape(1, -1))[:, :, None, None]
    beta_id = (z_id @ wf2.T + bf2.reshape(1, -1))[:, :, None, None]
    I = gamma_id * h + beta_id

    return (1.0 - M) * A + M * I


if __name__ == "__main__":
    # Small shapes consistent with the module's forward.
    B, c_h, c_attr, c_id, c_lamb, Hs, Ws = 4, 32, 16, 32, 8, 16, 16

    key = jax.random.PRNGKey(0)
    ks = jax.random.split(key, 14)

    # Deterministic synthetic parameters (1x1 conv weights stored squeezed).
    w1 = 0.1 * jax.random.normal(ks[0], (c_h, c_attr), jnp.float32)
    b1 = 0.1 * jax.random.normal(ks[1], (c_h,), jnp.float32)
    w2 = 0.1 * jax.random.normal(ks[2], (c_h, c_attr), jnp.float32)
    b2 = 0.1 * jax.random.normal(ks[3], (c_h,), jnp.float32)
    wf1 = 0.1 * jax.random.normal(ks[4], (c_h, c_id), jnp.float32)
    bf1 = 0.1 * jax.random.normal(ks[5], (c_h,), jnp.float32)
    wf2 = 0.1 * jax.random.normal(ks[6], (c_h, c_id), jnp.float32)
    bf2 = 0.1 * jax.random.normal(ks[7], (c_h,), jnp.float32)
    w2h = 0.1 * jax.random.normal(ks[8], (1, c_h + c_lamb), jnp.float32)
    b2h = 0.1 * jax.random.normal(ks[9], (1,), jnp.float32)
    params = (w1, b1, w2, b2, wf1, bf1, wf2, bf2, w2h, b2h)

    # Inputs.
    h_in = jax.random.normal(ks[10], (B, c_h, Hs, Ws), jnp.float32)
    z_attr = jax.random.normal(ks[11], (B, c_attr, Hs, Ws), jnp.float32)
    z_id = jax.random.normal(ks[12], (B, c_id), jnp.float32)
    lamb = jax.random.normal(ks[13], (B, c_lamb, Hs, Ws), jnp.float32)

    out = aii_layer_lambda(h_in, z_attr, z_id, lamb, params)
    out = jax.block_until_ready(out)

    ref = reference(h_in, z_attr, z_id, lamb, params)
    assert out.shape == (B, c_h, Hs, Ws)
    err = float(jnp.max(jnp.abs(out - ref)))
    assert jnp.allclose(out, ref, atol=1e-4, rtol=1e-4), f"max abs err {err}"

    # TODO(synk): the `lamb is None` branch of the PyTorch forward is not
    # exercised; it is the same kernel with the precomputed lam_logit replaced
    # by just the conv_2h bias.
    print("KERNEL_OK")
</pallas_src>

<mosaic_0001>
module attributes {stable_mosaic.version = 11 : i64} {
  func.func @_aii_kernel(%arg0: i32, %arg1: memref<2x32x256xf32, #tpu.memory_space<vmem>>, %arg2: memref<2x16x256xf32, #tpu.memory_space<vmem>>, %arg3: memref<2x1x256xf32, #tpu.memory_space<vmem>>, %arg4: memref<2x64x1xf32, #tpu.memory_space<vmem>>, %arg5: memref<64x16xf32, #tpu.memory_space<vmem>>, %arg6: memref<64x1xf32, #tpu.memory_space<vmem>>, %arg7: memref<32x1xf32, #tpu.memory_space<vmem>>, %arg8: memref<2x32x256xf32, #tpu.memory_space<vmem>>) attributes {dimension_semantics = [#tpu.dimension_semantics<parallel>], iteration_bounds = array<i64: 2>, scalar_prefetch = 0 : i64, scratch_operands = 0 : i64, tpu.core_type = #tpu.core_type<tc>, window_params = [{transform_indices = @transform_0, window_bounds = array<i64: 2, 32, 256>}, {transform_indices = @transform_1, window_bounds = array<i64: 2, 16, 256>}, {transform_indices = @transform_2, window_bounds = array<i64: 2, 1, 256>}, {transform_indices = @transform_3, window_bounds = array<i64: 2, 64, 1>}, {pipeline_mode = #tpu.pipeline_mode<synchronous>, transform_indices = @transform_4, window_bounds = array<i64: 64, 16>}, {pipeline_mode = #tpu.pipeline_mode<synchronous>, transform_indices = @transform_5, window_bounds = array<i64: 64, 1>}, {pipeline_mode = #tpu.pipeline_mode<synchronous>, transform_indices = @transform_6, window_bounds = array<i64: 32, 1>}, {transform_indices = @transform_7, window_bounds = array<i64: 2, 32, 256>}]} {
    %c0 = arith.constant 0 : index
    %c0_0 = arith.constant 0 : index
    %c0_1 = arith.constant 0 : index
    %0 = vector.load %arg1[%c0, %c0_0, %c0_1] : memref<2x32x256xf32, #tpu.memory_space<vmem>>, vector<2x32x256xf32>
    %cst = arith.constant dense<0.000000e+00> : vector<2x32xf32>
    %1 = vector.multi_reduction <add>, %0, %cst [2] : vector<2x32x256xf32> to vector<2x32xf32>
    %2 = vector.shape_cast %1 : vector<2x32xf32> to vector<2x32x1xf32>
    %cst_2 = arith.constant 2.560000e+02 : f32
    %3 = vector.broadcast %cst_2 : f32 to vector<2x32x1xf32>
    %4 = arith.divf %2, %3 : vector<2x32x1xf32>
    %5 = vector.broadcast %4 : vector<2x32x1xf32> to vector<2x32x256xf32>
    %6 = arith.subf %0, %5 : vector<2x32x256xf32>
    %7 = arith.mulf %6, %6 : vector<2x32x256xf32>
    %cst_3 = arith.constant dense<0.000000e+00> : vector<2x32xf32>
    %8 = vector.multi_reduction <add>, %7, %cst_3 [2] : vector<2x32x256xf32> to vector<2x32xf32>
    %9 = vector.shape_cast %8 : vector<2x32xf32> to vector<2x32x1xf32>
    %cst_4 = arith.constant 2.560000e+02 : f32
    %10 = vector.broadcast %cst_4 : f32 to vector<2x32x1xf32>
    %11 = arith.divf %9, %10 : vector<2x32x1xf32>
    %cst_5 = arith.constant 9.99999974E-6 : f32
    %12 = vector.broadcast %cst_5 : f32 to vector<2x32x1xf32>
    %13 = arith.addf %11, %12 : vector<2x32x1xf32>
    %14 = math.rsqrt %13 : vector<2x32x1xf32>
    %15 = vector.broadcast %14 : vector<2x32x1xf32> to vector<2x32x256xf32>
    %16 = arith.mulf %6, %15 : vector<2x32x256xf32>
    %c0_6 = arith.constant 0 : index
    %c0_7 = arith.constant 0 : index
    %17 = vector.load %arg7[%c0_6, %c0_7] : memref<32x1xf32, #tpu.memory_space<vmem>>, vector<32x1xf32>
    %18 = vector.shape_cast %17 : vector<32x1xf32> to vector<1x32x1xf32>
    %19 = vector.broadcast %18 : vector<1x32x1xf32> to vector<2x32x256xf32>
    %20 = arith.mulf %19, %16 : vector<2x32x256xf32>
    %cst_8 = arith.constant dense<0.000000e+00> : vector<2x256xf32>
    %21 = vector.multi_reduction <add>, %20, %cst_8 [1] : vector<2x32x256xf32> to vector<2x256xf32>
    %22 = vector.shape_cast %21 : vector<2x256xf32> to vector<2x1x256xf32>
    %c0_9 = arith.constant 0 : index
    %c0_10 = arith.constant 0 : index
    %c0_11 = arith.constant 0 : index
    %23 = vector.load %arg3[%c0_9, %c0_10, %c0_11] : memref<2x1x256xf32, #tpu.memory_space<vmem>>, vector<2x1x256xf32>
    %24 = arith.addf %22, %23 : vector<2x1x256xf32>
    %25 = arith.negf %24 : vector<2x1x256xf32>
    %26 = math.exp %25 : vector<2x1x256xf32>
    %cst_12 = arith.constant 1.000000e+00 : f32
    %27 = vector.broadcast %cst_12 : f32 to vector<2x1x256xf32>
    %28 = arith.addf %27, %26 : vector<2x1x256xf32>
    %29 = arith.divf %27, %28 : vector<2x1x256xf32>
    %c0_13 = arith.constant 0 : index
    %c0_14 = arith.constant 0 : index
    %30 = vector.load %arg5[%c0_13, %c0_14] : memref<64x16xf32, #tpu.memory_space<vmem>>, vector<64x16xf32>
    %c0_15 = arith.constant 0 : index
    %c0_16 = arith.constant 0 : index
    %31 = vector.load %arg6[%c0_15, %c0_16] : memref<64x1xf32, #tpu.memory_space<vmem>>, vector<64x1xf32>
    %c0_17 = arith.constant 0 : index
    %c0_18 = arith.constant 0 : index
    %c0_19 = arith.constant 0 : index
    %32 = vector.load %arg4[%c0_17, %c0_18, %c0_19] : memref<2x64x1xf32, #tpu.memory_space<vmem>>, vector<2x64x1xf32>
    %c0_20 = arith.constant 0 : index
    %c0_21 = arith.constant 0 : index
    %c0_22 = arith.constant 0 : index
    %33 = vector.load %arg2[%c0_20, %c0_21, %c0_22] : memref<2x16x256xf32, #tpu.memory_space<vmem>>, vector<1x16x256xf32>
    %34 = vector.shape_cast %33 : vector<1x16x256xf32> to vector<16x256xf32>
    %cst_23 = arith.constant dense<0.000000e+00> : vector<64x256xf32>
    %35 = tpu.matmul %30, %34, %cst_23 {dimension_numbers = #tpu.dot_dimension_numbers<[1], [0], [0], [1], [0, 0, 1, 1], [], []>} : vector<64x16xf32>, vector<16x256xf32>, vector<64x256xf32> -> vector<64x256xf32>
    %36 = vector.broadcast %31 : vector<64x1xf32> to vector<64x256xf32>
    %37 = arith.addf %35, %36 : vector<64x256xf32>
    %38 = vector.extract_strided_slice %37 {offsets = [0, 0], sizes = [32, 256], strides = [1, 1]} : vector<64x256xf32> to vector<32x256xf32>
    %39 = vector.extract_strided_slice %37 {offsets = [32, 0], sizes = [32, 256], strides = [1, 1]} : vector<64x256xf32> to vector<32x256xf32>
    %40 = vector.extract_strided_slice %32 {offsets = [0, 0, 0], sizes = [1, 32, 1], strides = [1, 1, 1]} : vector<2x64x1xf32> to vector<1x32x1xf32>
    %41 = vector.shape_cast %40 : vector<1x32x1xf32> to vector<32x1xf32>
    %42 = vector.extract_strided_slice %32 {offsets = [0, 32, 0], sizes = [1, 32, 1], strides = [1, 1, 1]} : vector<2x64x1xf32> to vector<1x32x1xf32>
    %43 = vector.shape_cast %42 : vector<1x32x1xf32> to vector<32x1xf32>
    %44 = vector.extract_strided_slice %16 {offsets = [0, 0, 0], sizes = [1, 32, 256], strides = [1, 1, 1]} : vector<2x32x256xf32> to vector<1x32x256xf32>
    %45 = vector.shape_cast %44 : vector<1x32x256xf32> to vector<32x256xf32>
    %46 = arith.mulf %38, %45 : vector<32x256xf32>
    %47 = arith.addf %46, %39 : vector<32x256xf32>
    %48 = vector.broadcast %41 : vector<32x1xf32> to vector<32x256xf32>
    %49 = arith.mulf %48, %45 : vector<32x256xf32>
    %50 = vector.broadcast %43 : vector<32x1xf32> to vector<32x256xf32>
    %51 = arith.addf %49, %50 : vector<32x256xf32>
    %52 = vector.extract_strided_slice %29 {offsets = [0, 0, 0], sizes = [1, 1, 256], strides = [1, 1, 1]} : vector<2x1x256xf32> to vector<1x1x256xf32>
    %53 = vector.shape_cast %52 : vector<1x1x256xf32> to vector<1x256xf32>
    %54 = arith.subf %51, %47 : vector<32x256xf32>
    %55 = vector.broadcast %53 : vector<1x256xf32> to vector<32x256xf32>
    %56 = arith.mulf %55, %54 : vector<32x256xf32>
    %57 = arith.addf %47, %56 : vector<32x256xf32>
    %c0_24 = arith.constant 0 : index
    %c0_25 = arith.constant 0 : index
    %c0_26 = arith.constant 0 : index
    %58 = vector.load %arg8[%c0_24, %c0_25, %c0_26] : memref<2x32x256xf32, #tpu.memory_space<vmem>>, vector<1x32x256xf32>
    %59 = vector.shape_cast %58 : vector<1x32x256xf32> to vector<32x256xf32>
    %60 = vector.shape_cast %57 : vector<32x256xf32> to vector<1x32x256xf32>
    tpu.vector_store %arg8[%c0_24, %c0_25, %c0_26], %60 {strides = array<i32>} : memref<2x32x256xf32, #tpu.memory_space<vmem>>, vector<1x32x256xf32>,
    %c1 = arith.constant 1 : index
    %c0_27 = arith.constant 0 : index
    %c0_28 = arith.constant 0 : index
    %61 = vector.load %arg2[%c1, %c0_27, %c0_28] : memref<2x16x256xf32, #tpu.memory_space<vmem>>, vector<1x16x256xf32>
    %62 = vector.shape_cast %61 : vector<1x16x256xf32> to vector<16x256xf32>
    %cst_29 = arith.constant dense<0.000000e+00> : vector<64x256xf32>
    %63 = tpu.matmul %30, %62, %cst_29 {dimension_numbers = #tpu.dot_dimension_numbers<[1], [0], [0], [1], [0, 0, 1, 1], [], []>} : vector<64x16xf32>, vector<16x256xf32>, vector<64x256xf32> -> vector<64x256xf32>
    %64 = vector.broadcast %31 : vector<64x1xf32> to vector<64x256xf32>
    %65 = arith.addf %63, %64 : vector<64x256xf32>
    %66 = vector.extract_strided_slice %65 {offsets = [0, 0], sizes = [32, 256], strides = [1, 1]} : vector<64x256xf32> to vector<32x256xf32>
    %67 = vector.extract_strided_slice %65 {offsets = [32, 0], sizes = [32, 256], strides = [1, 1]} : vector<64x256xf32> to vector<32x256xf32>
    %68 = vector.extract_strided_slice %32 {offsets = [1, 0, 0], sizes = [1, 32, 1], strides = [1, 1, 1]} : vector<2x64x1xf32> to vector<1x32x1xf32>
    %69 = vector.shape_cast %68 : vector<1x32x1xf32> to vector<32x1xf32>
    %70 = vector.extract_strided_slice %32 {offsets = [1, 32, 0], sizes = [1, 32, 1], strides = [1, 1, 1]} : vector<2x64x1xf32> to vector<1x32x1xf32>
    %71 = vector.shape_cast %70 : vector<1x32x1xf32> to vector<32x1xf32>
    %72 = vector.extract_strided_slice %16 {offsets = [1, 0, 0], sizes = [1, 32, 256], strides = [1, 1, 1]} : vector<2x32x256xf32> to vector<1x32x256xf32>
    %73 = vector.shape_cast %72 : vector<1x32x256xf32> to vector<32x256xf32>
    %74 = arith.mulf %66, %73 : vector<32x256xf32>
    %75 = arith.addf %74, %67 : vector<32x256xf32>
    %76 = vector.broadcast %69 : vector<32x1xf32> to vector<32x256xf32>
    %77 = arith.mulf %76, %73 : vector<32x256xf32>
    %78 = vector.broadcast %71 : vector<32x1xf32> to vector<32x256xf32>
    %79 = arith.addf %77, %78 : vector<32x256xf32>
    %80 = vector.extract_strided_slice %29 {offsets = [1, 0, 0], sizes = [1, 1, 256], strides = [1, 1, 1]} : vector<2x1x256xf32> to vector<1x1x256xf32>
    %81 = vector.shape_cast %80 : vector<1x1x256xf32> to vector<1x256xf32>
    %82 = arith.subf %79, %75 : vector<32x256xf32>
    %83 = vector.broadcast %81 : vector<1x256xf32> to vector<32x256xf32>
    %84 = arith.mulf %83, %82 : vector<32x256xf32>
    %85 = arith.addf %75, %84 : vector<32x256xf32>
    %c1_30 = arith.constant 1 : index
    %c0_31 = arith.constant 0 : index
    %c0_32 = arith.constant 0 : index
    %86 = vector.load %arg8[%c1_30, %c0_31, %c0_32] : memref<2x32x256xf32, #tpu.memory_space<vmem>>, vector<1x32x256xf32>
    %87 = vector.shape_cast %86 : vector<1x32x256xf32> to vector<32x256xf32>
    %88 = vector.shape_cast %85 : vector<32x256xf32> to vector<1x32x256xf32>
    tpu.vector_store %arg8[%c1_30, %c0_31, %c0_32], %88 {strides = array<i32>} : memref<2x32x256xf32, #tpu.memory_space<vmem>>, vector<1x32x256xf32>,
    return
  }
  func.func @transform_0(%arg0: i32) -> (i32, i32, i32) {
    %c0_i32 = arith.constant 0 : i32
    %c0_i32_0 = arith.constant 0 : i32
    %c0_i32_1 = arith.constant 0 : i32
    return %arg0, %c0_i32, %c0_i32_0 : i32, i32, i32
  }
  func.func @transform_1(%arg0: i32) -> (i32, i32, i32) {
    %c0_i32 = arith.constant 0 : i32
    %c0_i32_0 = arith.constant 0 : i32
    %c0_i32_1 = arith.constant 0 : i32
    return %arg0, %c0_i32, %c0_i32_0 : i32, i32, i32
  }
  func.func @transform_2(%arg0: i32) -> (i32, i32, i32) {
    %c0_i32 = arith.constant 0 : i32
    %c0_i32_0 = arith.constant 0 : i32
    %c0_i32_1 = arith.constant 0 : i32
    return %arg0, %c0_i32, %c0_i32_0 : i32, i32, i32
  }
  func.func @transform_3(%arg0: i32) -> (i32, i32, i32) {
    %c0_i32 = arith.constant 0 : i32
    %c0_i32_0 = arith.constant 0 : i32
    %c0_i32_1 = arith.constant 0 : i32
    return %arg0, %c0_i32, %c0_i32_0 : i32, i32, i32
  }
  func.func @transform_4(%arg0: i32) -> (i32, i32) {
    %c0_i32 = arith.constant 0 : i32
    %c0_i32_0 = arith.constant 0 : i32
    %c0_i32_1 = arith.constant 0 : i32
    return %c0_i32, %c0_i32_0 : i32, i32
  }
  func.func @transform_5(%arg0: i32) -> (i32, i32) {
    %c0_i32 = arith.constant 0 : i32
    %c0_i32_0 = arith.constant 0 : i32
    %c0_i32_1 = arith.constant 0 : i32
    return %c0_i32, %c0_i32_0 : i32, i32
  }
  func.func @transform_6(%arg0: i32) -> (i32, i32) {
    %c0_i32 = arith.constant 0 : i32
    %c0_i32_0 = arith.constant 0 : i32
    %c0_i32_1 = arith.constant 0 : i32
    return %c0_i32, %c0_i32_0 : i32, i32
  }
  func.func @transform_7(%arg0: i32) -> (i32, i32, i32) {
    %c0_i32 = arith.constant 0 : i32
    %c0_i32_0 = arith.constant 0 : i32
    %c0_i32_1 = arith.constant 0 : i32
    return %arg0, %c0_i32, %c0_i32_0 : i32, i32, i32
  }
}

</mosaic_0001>

<bundles_post_ra>
// kernel: tpu_custom_call.1
= control target key start
LH: loop header
LB: loop body
LE: loop exit
PB: predicated region body
PF: predicated region fallthrough
CT: control target
= control target key end

     0   :  { %12 = vsyncpa [#allocation3], 0  ;;  %s2234_s0 = inlined_call_operand.vmem [shape: f32[4,32,256], index: 0, kind: input, shape index: {}]   ;;  %s2235_s1 = inlined_call_operand.vmem [shape: f32[4,16,256], index: 1, kind: input, shape index: {}]   ;;  %s2236_s2 = inlined_call_operand.vmem [shape: f32[4,1,256], index: 2, kind: input, shape index: {}]   ;;  %s2237_s3 = inlined_call_operand.vmem [shape: f32[4,64,1], index: 3, kind: input, shape index: {}]   ;;  %s2238_s4 = inlined_call_operand.vmem [shape: f32[64,16], index: 4, kind: input, shape index: {}]   ;;  %s2239_s5 = inlined_call_operand.vmem [shape: f32[64,1], index: 5, kind: input, shape index: {}]   ;;  %s2240_s6 = inlined_call_operand.vmem [shape: f32[32,1], index: 6, kind: input, shape index: {}]   ;;  %s2241_s7 = inlined_call_operand.hbm [shape: f32[4,32,256], index: 7, kind: output, shape index: {}]  }
   0x1   :  { %14 = vsyncpa [#allocation3 + $0x1], 0  ;;  %s1541_s24 = smov 0   ;;  %s1543_s25 = smov 0  }
   0x2   :  { %s1545_s26 = smov 0   ;;  %s1547_s27 = smov 0  }
   0x3 LB: > { %s1562_s28 = sadd.s32 4294967295, %s1494_s27   ;;  %s1298_s29 = sadd.s32 4294967294, %s1494_s27   ;;  %s1494_s27 = sphi %s1547_s27, %s2260_s27   ;;  %s1490_s26 = sphi %s1545_s26, %s2259_s26   ;;  %s1486_s25 = sphi %s1543_s25, %s2258_s25   ;;  %s1482_s24 = sphi %s1541_s24, %s2257_s24  }
   0x4   : > { %s1566_s30 = sadd.s32 1, %s1494_s27   ;;  %s194_s8 = sadd.s32 1, %s1490_s26 }
   0x5   : > { %s191_s9 = ssub.s32 %s1494_s27, %s1566_s30  ;;  %p204_p0 = scmp.ne.s32.totalorder %s1490_s26, %s1486_s25 }
   0x6   : > { %p192_p1 = scmp.eq.s32.totalorder %s191_s9, 0  ;;  %p205_p2 = scmp.eq.s32.totalorder %s1562_s28, 1 }
   0x7   : > { %p210_p3 = scmp.ne.s32.totalorder %s1486_s25, %s1482_s24  ;;  %p211_p4 = scmp.eq.s32.totalorder %s1298_s29, 1 }
   0x8   : > { %s1577_s10 = scalar_select %p192_p1, %s1490_s26, %s194_s8  }
   0x9   : > { %p1579_p5 = por %p205_p2, %p204_p0  ;;  %p1583_p6 = por %p211_p4, %p210_p3 }
   0xa   : > { %p1301_p7 = scmp.ge.s32.totalorder %s1494_s27, 1  ;;  %p277_p8 = scmp.lt.s32.totalorder %s1494_s27, 3 }
   0xc   : > { %p278_p9 = pnand %p1301_p7, %p277_p8 }
   0xe   : > { %281 = sbr.rel (%p278_p9) target bundleno = 490 (0x1ea), region = 48 }
  0x13   : > { %s1303_s13 = sshll.u32 %s1562_s28, 1  ;;  %v1496_v0 = vmov 0.0   ;;  %v628_v29 = vld [vmem:[%s2238_s4] sm:$0xff]  ;;  %vm704_vm0 = vcmask 130048   ;;  %v629_v34 = vld [vmem:[%s2238_s4 + $0x8] sm:$0xff]  ;;  %v630_v35 = vld [vmem:[%s2238_s4 + $0x10] sm:$0xff] }
  0x14   : > { %p328_p10 = scmp.lt.s32.totalorder %s1303_s13, 3  ;;  %793 = vmatprep.mubr.f32.mxu0 %v1496_v0  ;;  %1023 = vmatprep.mubr.f32.mxu1 %v1496_v0  ;;  %v631_v36 = vld [vmem:[%s2238_s4 + $0x18] sm:$0xff]  ;;  %v632_v37 = vld [vmem:[%s2238_s4 + $0x20] sm:$0xff]  ;;  %v633_v38 = vld [vmem:[%s2238_s4 + $0x28] sm:$0xff]  ;;  %v1497_v39 = vmov 0   ;;  %s1356_s22 = sshll.u32 %s1562_s28, 11 }
  0x15   : > { %1401 = vset.pattern.permute.xlu1 %v1497_v39  ;;  %1400 = vset.pattern.permute.xlu0 %v1497_v39  ;;  %v634_v40 = vld [vmem:[%s2238_s4 + $0x30] sm:$0xff]  ;;  %v635_v41 = vld [vmem:[%s2238_s4 + $0x38] sm:$0xff]  ;;  %s2178_s29 = scalar_lea.hbm %s2241_s7, %s1356_s22  ;;  %s1498_s9 = smov [#allocation2]  }
  0x16   : > { %s2262_s13 = smov (!%p328_p10, %s1303_s13), 3  ;;  %v638_v39 = vld [vmem:[%s2239_s5 + $0x10] sm:$0xff]  ;;  %s1438_s15 = sshll.u32 %s1498_s9, 4  ;;  %s1439_s15 = int_to_ptr.vmem [resolvable:$false] %s1438_s15 }
  0x17   : > { %s1352_s14 = sshll.u32 %s2262_s13, 6  ;;  %s1353_s18 = sshll.u32 %s2262_s13, 5 }
  0x18   : > { %s1600_s17 = scalar_lea.vmem %s2234_s0, %s1352_s14  ;;  %s339_s21 = scalar_lea.vmem %s2235_s1, %s1353_s18 }
  0x19   : > { %v1604_v1 = vld [vmem:[%s1600_s17] sm:$0xff]  ;;  %v1607_v2 = vld [vmem:[%s1600_s17 + $0x8] sm:$0xff]  ;;  %v1618_v6 = vld [vmem:[%s1600_s17 + $0x10] sm:$0xff]  ;;  %s1820_s18 = scalar_lea.vmem %s2237_s3, %s1352_s14  ;;  %s1440_s16 = scalar_lea.vmem %s1439_s15, 4096 }
  0x1a   : > { %v1610_v3 = vld [vmem:[%s1600_s17 + $0x40] sm:$0xff]  ;;  %v371_v4 = vadd.f32 %v1607_v2, %v1604_v1  ;;  %v1615_v5 = vld [vmem:[%s1600_s17 + $0x48] sm:$0xff]  ;;  %v1621_v7 = vld [vmem:[%s1600_s17 + $0x18] sm:$0xff] }
  0x1b   : > { %v383_v8 = vadd.f32 %v1615_v5, %v1610_v3  ;;  %v1626_v9 = vld [vmem:[%s1600_s17 + $0x50] sm:$0xff]  ;;  %v1629_v10 = vld [vmem:[%s1600_s17 + $0x58] sm:$0xff]  ;;  %v374_v11 = vadd.f32 %v1621_v7, %v1618_v6  ;;  %v1639_v13 = vld [vmem:[%s1600_s17 + $0x20] sm:$0xff] }
  0x1c   : > { %372 = vadd.xlane.f32.xlu0 %v371_v4  ;;  %v386_v12 = vadd.f32 %v1629_v10, %v1626_v9  ;;  %v1642_v14 = vld [vmem:[%s1600_s17 + $0x28] sm:$0xff]  ;;  %v1645_v15 = vld [vmem:[%s1600_s17 + $0x60] sm:$0xff]  ;;  %v663_v17 = vld [vmem:[%s339_s21 + $0x18] sm:$0xff] }
  0x1d   : > { %384 = vadd.xlane.f32.xlu1 %v383_v8  ;;  %v1648_v16 = vld [vmem:[%s1600_s17 + $0x68] sm:$0xff]  ;;  %v1329_v18 = vld [vmem:[%s339_s21 + $0x38] sm:$0xff]  ;;  %757 = vmatprep.subr.mxu0 %v663_v17  ;;  %v662_v19 = vld [vmem:[%s339_s21 + $0x10] sm:$0xff]  ;;  %v377_v22 = vadd.f32 %v1642_v14, %v1639_v13 }
  0x1e   : > { %987 = vmatprep.subr.mxu1 %v1329_v18  ;;  %v1328_v20 = vld [vmem:[%s339_s21 + $0x30] sm:$0xff]  ;;  %v661_v21 = vld [vmem:[%s339_s21 + $0x8] sm:$0xff]  ;;  %758 = vmatpush1.msra.mxu0 %v662_v19  ;;  %v660_v24 = vld [vmem:[%s339_s21] sm:$0xff]  ;;  %v389_v26 = vadd.f32 %v1648_v16, %v1645_v15 }
  0x1f   : > { %v1327_v23 = vld [vmem:[%s339_s21 + $0x28] sm:$0xff]  ;;  %v1326_v25 = vld [vmem:[%s339_s21 + $0x20] sm:$0xff]  ;;  %v1655_v27 = vld [vmem:[%s1600_s17 + $0x30] sm:$0xff]  ;;  %988 = vmatpush1.msra.mxu1 %v1328_v20  ;;  %759 = vmatprep.subr.mxu0 %v661_v21  ;;  %s1310_s21 = sshll.u32 %s2262_s13, 1 }
  0x20   : > { %375 = vadd.xlane.f32.xlu0 %v374_v11  ;;  %v1658_v28 = vld [vmem:[%s1600_s17 + $0x38] sm:$0xff]  ;;  %v1664_v30 = vld [vmem:[%s1600_s17 + $0x70] sm:$0xff]  ;;  %989 = vmatprep.subr.mxu1 %v1327_v23  ;;  %s1833_s8 = scalar_lea.vmem %s2236_s2, %s1310_s21 }
  0x21   : > { %387 = vadd.xlane.f32.xlu1 %v386_v12  ;;  %v1667_v31 = vld [vmem:[%s1600_s17 + $0x78] sm:$0xff]  ;;  %760 = vmatpush1.msra.mxu0 %v660_v24  ;;  %v380_v32 = vadd.f32 %v1658_v28, %v1655_v27 }
  0x22   : > { %990 = vmatpush1.msra.mxu1 %v1326_v25  ;;  %1318 = vmatmul.mubr.msk.f32.vlgmr.msra.gmra.mxu0 %vm704_vm0, %v628_v29  ;;  %v392_v33 = vadd.f32 %v1667_v31, %v1664_v30 }
  0x23   : > { %1330 = vmatmul.mubr.msk.f32.vlgmr.msra.gmra.mxu1 %vm704_vm0, %v628_v29  ;;  %799 = vmatprep.mubr.f32.mxu0 %v1496_v0  ;;  %v500_v29 = vld [vmem:[%s2240_s6] sm:$0xff] }
  0x24   : > { %378 = vadd.xlane.f32.xlu0 %v377_v22  ;;  %1029 = vmatprep.mubr.f32.mxu1 %v1496_v0 }
  0x25   : > { %390 = vadd.xlane.f32.xlu1 %v389_v26 }
  0x26   : > { %1319 = vmatmul.mubr.msk.f32.gmra.mxu0 %vm704_vm0, %v629_v34 }
  0x27   : > { %1331 = vmatmul.mubr.msk.f32.gmra.mxu1 %vm704_vm0, %v629_v34  ;;  %805 = vmatprep.mubr.f32.mxu0 %v1496_v0  ;;  %v636_v34 = vld [vmem:[%s2239_s5] sm:$0xff] }
  0x28   : > { %381 = vadd.xlane.f32.xlu0 %v380_v32  ;;  %1035 = vmatprep.mubr.f32.mxu1 %v1496_v0  ;;  %v503_v32 = vld [vmem:[%s2240_s6 + $0x18] sm:$0xff] }
  0x29   : > { %393 = vadd.xlane.f32.xlu1 %v392_v33  ;;  %v641_v33 = vld [vmem:[%s2239_s5 + $0x28] sm:$0xff] }
  0x2a   : > { %1320 = vmatmul.mubr.msk.f32.gmra.mxu0 %vm704_vm0, %v630_v35 }
  0x2b   : > { %1332 = vmatmul.mubr.msk.f32.gmra.mxu1 %vm704_vm0, %v630_v35  ;;  %811 = vmatprep.mubr.f32.mxu0 %v1496_v0  ;;  %v643_v35 = vld [vmem:[%s2239_s5 + $0x38] sm:$0xff] }
  0x2c   : > { %1041 = vmatprep.mubr.f32.mxu1 %v1496_v0 }
  0x2e   : > { %1321 = vmatmul.mubr.msk.f32.gmra.mxu0 %vm704_vm0, %v631_v36 }
  0x2f   : > { %1333 = vmatmul.mubr.msk.f32.gmra.mxu1 %vm704_vm0, %v631_v36  ;;  %817 = vmatprep.mubr.f32.mxu0 %v1496_v0  ;;  %v637_v36 = vld [vmem:[%s2239_s5 + $0x8] sm:$0xff] }
  0x30   : > { %1047 = vmatprep.mubr.f32.mxu1 %v1496_v0 }
  0x32   : > { %1322 = vmatmul.mubr.msk.f32.gmra.mxu0 %vm704_vm0, %v632_v37 }
  0x33   : > { %1334 = vmatmul.mubr.msk.f32.gmra.mxu1 %vm704_vm0, %v632_v37  ;;  %823 = vmatprep.mubr.f32.mxu0 %v1496_v0  ;;  %v645_v37 = vld [vmem:[%s1820_s18 + $0x8] sm:$0xff] }
  0x34   : > { %1053 = vmatprep.mubr.f32.mxu1 %v1496_v0 }
  0x36   : > { %1323 = vmatmul.mubr.msk.f32.gmra.mxu0 %vm704_vm0, %v633_v38 }
  0x37   : > { %1335 = vmatmul.mubr.msk.f32.gmra.mxu1 %vm704_vm0, %v633_v38  ;;  %829 = vmatprep.mubr.f32.mxu0 %v1496_v0  ;;  %v580_v38 = vlaneseq }
  0x38   : > { %1059 = vmatprep.mubr.f32.mxu1 %v1496_v0 }
  0x3a   : > { %1324 = vmatmul.mubr.msk.f32.gmra.mxu0 %vm704_vm0, %v634_v40 }
  0x3b   : > { %1336 = vmatmul.mubr.msk.f32.gmra.mxu1 %vm704_vm0, %v634_v40  ;;  %835 = vmatprep.mubr.f32.mxu0 %v1496_v0  ;;  %v1835_v40 = vshrl.u32 %v580_v38, 7 }
  0x3c   : > { %1065 = vmatprep.mubr.f32.mxu1 %v1496_v0 }
  0x3e   : > { %1325 = vmatmul.mubr.msk.f32.gmra.mxu0 %vm704_vm0, %v635_v41 }
  0x3f   : > { %1337 = vmatmul.mubr.msk.f32.gmra.mxu1 %vm704_vm0, %v635_v41  ;;  %v647_v41 = vld [vmem:[%s1820_s18 + $0x18] sm:$0xff] }
  0xa5   : > { %v373_v42 = vpop.xlane.xlu0 %372 }
  0xa6   : > { %v396_v43 = vmul.f32 0.00390625, %v373_v42  ;;  %v385_v44 = vpop.xlane.xlu1 %384  ;;  %v1839_v42 = vld [vmem:[%s1833_s8 + $0x2] sm:$0x3] }
  0xa7   : > { %v400_v45 = vmul.f32 0.00390625, %v385_v44 }
  0xa8   : > { %v1725_v46 = vsub.f32 %v1604_v1, %v396_v43  ;;  %v1728_v47 = vsub.f32 %v1607_v2, %v396_v43  ;;  %v586_v43 = vsub.s32 1, %v1835_v40 }
  0xa9   : > { %v1731_v48 = vsub.f32 %v1610_v3, %v400_v45  ;;  %v1734_v49 = vsub.f32 %v1615_v5, %v400_v45  ;;  %v376_v50 = vpop.xlane.xlu0 %375  ;;  %v653_v45 = vld [vmem:[%s1820_s18 + $0x48] sm:$0xff] }
  0xaa   : > { %v397_v51 = vmul.f32 0.00390625, %v376_v50  ;;  %v388_v52 = vpop.xlane.xlu1 %387  ;;  %v420_v53 = vmul.f32 %v1725_v46, %v1725_v46  ;;  %v421_v54 = vmul.f32 %v1728_v47, %v1728_v47  ;;  %v1845_v44 = vrot.slane %v1839_v42, %v586_v43  ;;  %v655_v50 = vld [vmem:[%s1820_s18 + $0x58] sm:$0xff] }
  0xab   : > { %v401_v55 = vmul.f32 0.00390625, %v388_v52  ;;  %v428_v56 = vmul.f32 %v1731_v48, %v1731_v48  ;;  %v429_v57 = vmul.f32 %v1734_v49, %v1734_v49  ;;  %v651_v52 = vld [vmem:[%s1820_s18 + $0x38] sm:$0xff] }
  0xac   : > { %v1745_v58 = vsub.f32 %v1618_v6, %v397_v51  ;;  %v1748_v59 = vsub.f32 %v1621_v7, %v397_v51  ;;  %v436_v60 = vadd.f32 %v421_v54, %v420_v53  ;;  %v649_v51 = vld [vmem:[%s1820_s18 + $0x28] sm:$0xff] }
  0xad   : > { %v1751_v61 = vsub.f32 %v1626_v9, %v401_v55  ;;  %v1754_v62 = vsub.f32 %v1629_v10, %v401_v55  ;;  %v379_v63 = vpop.xlane.xlu0 %378  ;;  %v448_v2 = vadd.f32 %v429_v57, %v428_v56  ;;  %v657_v54 = vld [vmem:[%s1820_s18 + $0x68] sm:$0xff]  ;;  %v659_v56 = vld [vmem:[%s1820_s18 + $0x78] sm:$0xff] }
  0xae   : > { %v398_v0 = vmul.f32 0.00390625, %v379_v63  ;;  %437 = vadd.xlane.f32.xlu0 %v436_v60  ;;  %v391_v1 = vpop.xlane.xlu1 %390  ;;  %v422_v3 = vmul.f32 %v1745_v58, %v1745_v58  ;;  %v423_v4 = vmul.f32 %v1748_v59, %v1748_v59 }
  0xaf   : > { %v402_v5 = vmul.f32 0.00390625, %v391_v1  ;;  %v430_v6 = vmul.f32 %v1751_v61, %v1751_v61  ;;  %v431_v7 = vmul.f32 %v1754_v62, %v1754_v62 }
  0xb0   : > { %v1765_v8 = vsub.f32 %v1639_v13, %v398_v0  ;;  %v1768_v9 = vsub.f32 %v1642_v14, %v398_v0  ;;  %v439_v10 = vadd.f32 %v423_v4, %v422_v3  ;;  %v644_v3 = vld [vmem:[%s1820_s18] sm:$0xff]  ;;  %v646_v4 = vld [vmem:[%s1820_s18 + $0x10] sm:$0xff] }
  0xb1   : > { %v1771_v11 = vsub.f32 %v1645_v15, %v402_v5  ;;  %v1774_v12 = vsub.f32 %v1648_v16, %v402_v5  ;;  %v382_v17 = vpop.xlane.xlu0 %381  ;;  %v451_v19 = vadd.f32 %v431_v7, %v430_v6  ;;  %v652_v5 = vld [vmem:[%s1820_s18 + $0x40] sm:$0xff]  ;;  %v654_v6 = vld [vmem:[%s1820_s18 + $0x50] sm:$0xff] }
  0xb2   : > { %v399_v18 = vmul.f32 0.00390625, %v382_v17  ;;  %449 = vadd.xlane.f32.xlu0 %v448_v2  ;;  %440 = vadd.xlane.f32.xlu1 %v439_v10  ;;  %v424_v20 = vmul.f32 %v1765_v8, %v1765_v8  ;;  %v425_v13 = vmul.f32 %v1768_v9, %v1768_v9  ;;  %v394_v53 = vpop.xlane.xlu1 %393  ;;  %v642_v2 = vld [vmem:[%s2239_s5 + $0x30] sm:$0xff]  ;;  %v648_v10 = vld [vmem:[%s1820_s18 + $0x20] sm:$0xff] }
  0xb3   : > { %v432_v14 = vmul.f32 %v1771_v11, %v1771_v11  ;;  %v433_v15 = vmul.f32 %v1774_v12, %v1774_v12  ;;  %v403_v55 = vmul.f32 0.00390625, %v394_v53 }
  0xb4   : > { %v1785_v16 = vsub.f32 %v1655_v27, %v399_v18  ;;  %v1788_v21 = vsub.f32 %v1658_v28, %v399_v18  ;;  %v442_v22 = vadd.f32 %v425_v13, %v424_v20  ;;  %v501_v27 = vld [vmem:[%s2240_s6 + $0x8] sm:$0xff]  ;;  %v502_v28 = vld [vmem:[%s2240_s6 + $0x10] sm:$0xff]  ;;  %v656_v20 = vld [vmem:[%s1820_s18 + $0x60] sm:$0xff] }
  0xb5   : > { %v454_v23 = vadd.f32 %v433_v15, %v432_v14  ;;  %v1854_v57 = vsub.f32 %v1664_v30, %v403_v55  ;;  %v1857_v60 = vsub.f32 %v1667_v31, %v403_v55  ;;  %v639_v30 = vld [vmem:[%s2239_s5 + $0x18] sm:$0xff]  ;;  %v640_v31 = vld [vmem:[%s2239_s5 + $0x20] sm:$0xff]  ;;  %v650_v18 = vld [vmem:[%s1820_s18 + $0x30] sm:$0xff] }
  0xb6   : > { %452 = vadd.xlane.f32.xlu1 %v451_v19  ;;  %443 = vadd.xlane.f32.xlu0 %v442_v22  ;;  %v426_v24 = vmul.f32 %v1785_v16, %v1785_v16  ;;  %v427_v25 = vmul.f32 %v1788_v21, %v1788_v21  ;;  %v658_v22 = vld [vmem:[%s1820_s18 + $0x70] sm:$0xff]  ;;  %s324_s18 = sand.u32 1, %s1486_s25  }
  0xb7   : > { %v434_v63 = vmul.f32 %v1854_v57, %v1854_v57  ;;  %v435_v0 = vmul.f32 %v1857_v60, %v1857_v60  ;;  %s1302_s20 = sshll.u32 %s324_s18, 7 }
  0xb8   : > { %v445_v26 = vadd.f32 %v427_v25, %v426_v24  ;;  %s2049_s21 = scalar_lea.vmem [#allocation2], %s1302_s20 }
  0xb9   : > { %v457_v1 = vadd.f32 %v435_v0, %v434_v63  ;;  %s1200_s23 = sshll.u32 %s2049_s21, 4  ;;  %s2180_s23 = int_to_ptr.vmem [resolvable:$true] %s1200_s23 }
  0xba   : > { %455 = vadd.xlane.f32.xlu1 %v454_v23  ;;  %446 = vadd.xlane.f32.xlu0 %v445_v26  ;;  %s1434_s13 = scalar_lea.vmem %s2180_s23, 2048  ;;  %p1441_p0 = scmp.lt.s32.totalorder %s2180_s23, %s1439_s15 }
  0xbb   : > { %p1435_p11 = scmp.ne.s32.totalorder %s2180_s23, %s1434_s13  ;;  %p1442_p1 = scmp.lt.s32.totalorder %s1440_s16, %s1434_s13 }
  0xbd   : > { %p1436_p12 = pnand %p1435_p11, %p1579_p5  ;;  %p1443_p2 = por %p1442_p1, %p1441_p0 }
  0xbf   : > { %p1437_p13 = pneg %p1436_p12 }
  0xc1   : > { %p1444_p3 = pnand %p1443_p2, %p1437_p13 }
  0xcb   : > { %511 = vperm.xlu1 %1401, %v501_v27  }
  0xcf   : > { %516 = vperm.xlu1 %1401, %v502_v28  }
  0xd0   : > { %506 = vperm.xlu0 %1400, %v500_v29  }
  0xd3   : > { %521 = vperm.xlu1 %1401, %v503_v32  }
  0xd4   : > { %691 = vperm.xlu0 %1400, %v641_v33  }
  0xd7   : > { %666 = vperm.xlu1 %1401, %v636_v34  }
  0xd8   : > { %701 = vperm.xlu0 %1400, %v643_v35  }
  0xdb   : > { %671 = vperm.xlu1 %1401, %v637_v36  }
  0xdc   : > { %865 = vperm.xlu0 %1400, %v645_v37  }
  0xdf   : > { %676 = vperm.xlu1 %1401, %v638_v39  }
  0xe0   : > { %875 = vperm.xlu0 %1400, %v647_v41  }
  0xe3   : > { %v1876_v7 = vpop.f32.mrf.mxu1 }
  0xe4   : > { %1095 = vperm.xlu0 %1400, %v653_v45  }
  0xe5   : > { %v1879_v17 = vpop.f32.mrf.mxu1 }
  0xe7   : > { %v1882_v19 = vpop.f32.mrf.mxu1 }
  0xe8   : > { %1105 = vperm.xlu0 %1400, %v655_v50  }
  0xe9   : > { %v1885_v13 = vpop.f32.mrf.mxu1 }
  0xeb   : > { %v1888_v23 = vpop.f32.mrf.mxu1 }
  0xec   : > { %893 = vperm.xlu0 %1400, %v649_v51  }
  0xed   : > { %v1890_v29 = vpop.f32.mrf.mxu1 }
  0xef   : > { %v1892_v38 = vpop.f32.mrf.mxu1 }
  0xf0   : > { %903 = vperm.xlu0 %1400, %v651_v52  }
  0xf1   : > { %v1894_v53 = vpop.f32.mrf.mxu1 }
  0xf3   : > { %v1896_v63 = vpop.f32.mrf.mxu1 }
  0xf4   : > { %1123 = vperm.xlu0 %1400, %v657_v54  }
  0xf8   : > { %1133 = vperm.xlu0 %1400, %v659_v56  }
 0x103   : > { %458 = vadd.xlane.f32.xlu1 %v457_v1 }
 0x114   : > { %681 = vperm.xlu1 %1401, %v639_v30  }
 0x118   : > { %686 = vperm.xlu1 %1401, %v640_v31  }
 0x11c   : > { %696 = vperm.xlu1 %1401, %v642_v2   ;;  %v1898_v2 = vpop.f32.mrf.mxu1 }
 0x120   : > { %860 = vperm.xlu1 %1401, %v644_v3  }
 0x124   : > { %870 = vperm.xlu1 %1401, %v646_v4  }
 0x128   : > { %1090 = vperm.xlu1 %1401, %v652_v5  }
 0x12c   : > { %1100 = vperm.xlu1 %1401, %v654_v6  }
 0x130   : > { %888 = vperm.xlu1 %1401, %v648_v10  }
 0x134   : > { %898 = vperm.xlu1 %1401, %v650_v18  }
 0x137   : > { %v438_v14 = vpop.xlane.xlu0 %437 }
 0x138   : > { %v460_v15 = vmul.f32 0.00390625, %v438_v14  ;;  %1118 = vperm.xlu1 %1401, %v656_v20  }
 0x13a   : > { %v468_v24 = vadd.f32 1e-05, %v460_v15 }
 0x13b   : > { %v441_v25 = vpop.xlane.xlu1 %440  ;;  %v450_v26 = vpop.xlane.xlu0 %449 }
 0x13c   : > { %v461_v27 = vmul.f32 0.00390625, %v441_v25  ;;  %v464_v28 = vmul.f32 0.00390625, %v450_v26  ;;  %1128 = vperm.xlu1 %1401, %v658_v22   ;;  %1402 = vrsqrt.f32 %v468_v24  ;;  %v1055_v24 = vpop.f32.mrf.mxu1 }
 0x13e   : > { %v469_v32 = vadd.f32 1e-05, %v461_v27  ;;  %v472_v33 = vadd.f32 1e-05, %v464_v28 }
 0x13f   : > { %v453_v34 = vpop.xlane.xlu1 %452  ;;  %v444_v35 = vpop.xlane.xlu0 %443 }
 0x140   : > { %1404 = vrsqrt.f32 %v469_v32  ;;  %v465_v36 = vmul.f32 0.00390625, %v453_v34  ;;  %v462_v37 = vmul.f32 0.00390625, %v444_v35  ;;  %v1939_v34 = vpop.f32.mrf.mxu0 }
 0x141   : > { %1406 = vrsqrt.f32 %v472_v33 }
 0x142   : > { %v473_v39 = vadd.f32 1e-05, %v465_v36  ;;  %v470_v41 = vadd.f32 1e-05, %v462_v37 }
 0x143   : > { %v456_v45 = vpop.xlane.xlu1 %455  ;;  %v447_v50 = vpop.xlane.xlu0 %446 }
 0x144   : > { %1408 = vrsqrt.f32 %v473_v39  ;;  %v466_v51 = vmul.f32 0.00390625, %v456_v45  ;;  %v463_v52 = vmul.f32 0.00390625, %v447_v50 }
 0x145   : > { %1410 = vrsqrt.f32 %v470_v41 }
 0x146   : > { %v474_v54 = vadd.f32 1e-05, %v466_v51  ;;  %v471_v55 = vadd.f32 1e-05, %v463_v52 }
 0x147   : > { %v512_v56 = vpop.permute.xlu1 %511 }
 0x148   : > { %1412 = vrsqrt.f32 %v474_v54 }
 0x149   : > { %1414 = vrsqrt.f32 %v471_v55  ;;  %v1403_v30 = vpop.eup %1402 }
 0x14a   : > { %v1907_v6 = vmul.f32 %v1403_v30, %v1725_v46  ;;  %v1921_v22 = vmul.f32 %v1403_v30, %v1728_v47 }
 0x14b   : > { %v517_v0 = vpop.permute.xlu1 %516  ;;  %v507_v1 = vpop.permute.xlu0 %506 }
 0x14c   : > { %v524_v47 = vmul.f32 %v507_v1, %v1907_v6 }
 0x14d   : > { %v1405_v31 = vpop.eup %1404 }
 0x14e   : > { %v1407_v3 = vpop.eup %1406  ;;  %v1901_v4 = vmul.f32 %v1405_v31, %v1745_v58  ;;  %v1904_v5 = vmul.f32 %v1405_v31, %v1748_v59  ;;  %v1960_v31 = vpop.f32.mrf.mxu0 }
 0x14f   : > { %v1910_v10 = vmul.f32 %v1407_v3, %v1731_v48  ;;  %v1913_v18 = vmul.f32 %v1407_v3, %v1734_v49  ;;  %v1915_v20 = vpop.permute.xlu1 %521  ;;  %v1917_v14 = vpop.permute.xlu0 %691 }
 0x150   : > { %v526_v58 = vmul.f32 %v512_v56, %v1901_v4  ;;  %v527_v26 = vmul.f32 %v512_v56, %v1904_v5 }
 0x151   : > { %v1409_v15 = vpop.eup %1408  ;;  %v532_v59 = vmul.f32 %v507_v1, %v1910_v10  ;;  %v533_v46 = vmul.f32 %v507_v1, %v1913_v18 }
 0x152   : > { %v1411_v48 = vpop.eup %1410  ;;  %v494_v25 = vmul.f32 %v1409_v15, %v1751_v61  ;;  %v495_v49 = vmul.f32 %v1409_v15, %v1754_v62  ;;  %v540_v39 = vadd.f32 %v526_v58, %v524_v47 }
 0x153   : > { %v1929_v27 = vmul.f32 %v1411_v48, %v1765_v8  ;;  %v1932_v28 = vmul.f32 %v1411_v48, %v1768_v9  ;;  %v1935_v32 = vpop.permute.xlu1 %666  ;;  %v1937_v33 = vpop.permute.xlu0 %701  ;;  %v525_v8 = vmul.f32 %v507_v1, %v1921_v22 }
 0x154   : > { %v534_v35 = vmul.f32 %v512_v56, %v494_v25  ;;  %v535_v61 = vmul.f32 %v512_v56, %v495_v49  ;;  %v1057_v9 = vpop.f32.mrf.mxu1 }
 0x155   : > { %v1413_v36 = vpop.eup %1412  ;;  %v528_v62 = vmul.f32 %v517_v0, %v1929_v27  ;;  %v529_v37 = vmul.f32 %v517_v0, %v1932_v28  ;;  %v549_v54 = vadd.f32 %v527_v26, %v525_v8  ;;  %v1058_v15 = vadd.f32 %v1057_v9, %v1917_v14 }
 0x156   : > { %v1415_v41 = vpop.eup %1414  ;;  %v1945_v45 = vmul.f32 %v1413_v36, %v1771_v11  ;;  %v1948_v50 = vmul.f32 %v1413_v36, %v1774_v12  ;;  %v558_v51 = vadd.f32 %v534_v35, %v532_v59  ;;  %v567_v52 = vadd.f32 %v535_v61, %v533_v46  ;;  %v801_v36 = vpop.f32.mrf.mxu0 }
 0x157   : > { %v1951_v55 = vmul.f32 %v1415_v41, %v1785_v16  ;;  %v1954_v56 = vmul.f32 %v1415_v41, %v1788_v21  ;;  %v1956_v30 = vpop.permute.xlu1 %671  ;;  %v1958_v1 = vpop.permute.xlu0 %865  ;;  %v541_v3 = vadd.f32 %v540_v39, %v528_v62  ;;  %v550_v58 = vadd.f32 %v549_v54, %v529_v37 }
 0x158   : > { %2249 = vst [vmem:[#allocation5_spill] sm:$0xff] %v1948_v50  ;;  %v536_v11 = vmul.f32 %v517_v0, %v1945_v45  ;;  %v537_v12 = vmul.f32 %v517_v0, %v1948_v50  ;;  %v1034_v59 = vadd.f32 %v1885_v13, %v1956_v30  ;;  %v1032_v0 = vadd.f32 %v1882_v19, %v1956_v30  ;;  %v803_v54 = vpop.f32.mrf.mxu0 }
 0x159   : > { %v530_v16 = vmul.f32 %v1915_v20, %v1951_v55  ;;  %v531_v21 = vmul.f32 %v1915_v20, %v1954_v56  ;;  %v1056_v62 = vadd.f32 %v1055_v24, %v1917_v14  ;;  %v1028_v19 = vadd.f32 %v1879_v17, %v1935_v32 }
 0x15a   : > { %v1971_v46 = vadd.f32 %v558_v51, %v536_v11  ;;  %v1973_v48 = vadd.f32 %v567_v52, %v537_v12  ;;  %v1075_v35 = vmul.f32 %v1034_v59, %v495_v49  ;;  %v1074_v13 = vmul.f32 %v1032_v0, %v494_v25 }
 0x15b   : > { %v542_v26 = vadd.f32 %v541_v3, %v530_v16  ;;  %v551_v47 = vadd.f32 %v550_v58, %v531_v21  ;;  %v1977_v61 = vpop.permute.xlu0 %875  ;;  %v1026_v51 = vadd.f32 %v1876_v7, %v1935_v32  ;;  %v1989_v24 = vsub.s32 0, %v1835_v40  ;;  %v576_v21 = vld [vmem:[%s1833_s8] sm:$0x3]  ;;  %s2194_s8 = scalar_lea.sflag [#allocation3], %s324_s18 }
 0x15c   : > { %v1980_v39 = vadd.f32 %v1075_v35, %v1058_v15  ;;  %v1986_v3 = vadd.f32 %v1074_v13, %v1056_v62  ;;  %v1998_v17 = vmul.f32 %v1028_v19, %v1913_v18 }
 0x15d   : > { %v543_v8 = vrot.slane %v542_v26, 4  ;;  %v552_v37 = vrot.slane %v551_v47, 4  ;;  %v1995_v7 = vmul.f32 %v1026_v51, %v1910_v10 }
 0x15e   : > { %2250 = vst [vmem:[#allocation6_spill] sm:$0xff] %v1980_v39 }
 0x15f   : > { %v544_v9 = vadd.f32 %v543_v8, %v542_v26  ;;  %v553_v41 = vadd.f32 %v552_v37, %v551_v47  ;;  %v1096_v52 = vpop.permute.xlu0 %1095  ;;  %v587_v26 = vrot.slane %v576_v21, %v586_v43 }
 0x160   : > { %v1110_v11 = vmul.f32 %v1096_v52, %v494_v25  ;;  %v1111_v12 = vmul.f32 %v1096_v52, %v495_v49  ;;  %v2000_v25 = vpop.f32.mrf.mxu0  ;;  %v583_v49 = vrot.slane %v576_v21, %v1989_v24 }
 0x161   : > { %v545_v15 = vrot.slane %v544_v9, 2  ;;  %v554_v16 = vrot.slane %v553_v41, 2 }
 0x162   : > { %v2005_v13 = vpop.f32.mrf.mxu0 }
 0x163   : > { %v546_v58 = vadd.f32 %v545_v15, %v544_v9  ;;  %v555_v59 = vadd.f32 %v554_v16, %v553_v41  ;;  %v1992_v0 = vpop.permute.xlu0 %1105 }
 0x164   : > { %v813_v15 = vpop.f32.mrf.mxu0 }
 0x165   : > { %v547_v47 = vrot.slane %v546_v58, 1  ;;  %v556_v35 = vrot.slane %v555_v59, 1 }
 0x166   : > { %v815_v50 = vpop.f32.mrf.mxu0 }
 0x167   : > { %v548_v62 = vadd.f32 %v547_v47, %v546_v58  ;;  %v557_v8 = vadd.f32 %v556_v35, %v555_v59  ;;  %v894_v37 = vpop.permute.xlu0 %893 }
 0x168   : > { %v2017_v59 = vpop.f32.mrf.mxu0 }
 0x169   : > { %v600_v9 = vadd.f32 %v583_v49, %v548_v62  ;;  %v601_v41 = vadd.f32 %v587_v26, %v557_v8 }
 0x16a   : > { %v2019_v49 = vpop.f32.mrf.mxu0 }
 0x16b   : > { %v1314_v51 = vmul.f32 -1.442695, %v600_v9  ;;  %v1315_v52 = vmul.f32 -1.442695, %v601_v41  ;;  %v2007_v19 = vpop.permute.xlu0 %903  ;;  %v804_v9 = vadd.f32 %v803_v54, %v1956_v30  ;;  %v2035_v54 = vpop.permute.xlu1 %676 }
 0x16c   : > { %v825_v8 = vpop.f32.mrf.mxu0 }
 0x16d   : > { %1416 = vpow2.f32 %v1314_v51  ;;  %v826_v51 = vadd.f32 %v825_v8, %v1917_v14 }
 0x16e   : > { %1418 = vpow2.f32 %v1315_v52  ;;  %v880_v52 = vmul.f32 %v1958_v1, %v1901_v4 }
 0x16f   : > { %v1124_v16 = vpop.permute.xlu0 %1123 }
 0x170   : > { %v2009_v40 = vadd.f32 %v1124_v16, %v1110_v11  ;;  %v2011_v43 = vadd.f32 %v1124_v16, %v1111_v12  ;;  %v827_v11 = vpop.f32.mrf.mxu0  ;;  %v802_v12 = vadd.f32 %v801_v36, %v1956_v30  ;;  %v908_v30 = vadd.f32 %v894_v37, %v880_v52 }
 0x172   : > { %2251 = vst [vmem:[#allocation7_spill] sm:$0xff] %v2011_v43  ;;  %v2023_v41 = vpop.f32.mrf.mxu0  ;;  %v844_v16 = vmul.f32 %v802_v12, %v1901_v4 }
 0x174   : > { %v2033_v36 = vpop.f32.mrf.mxu0  ;;  %v852_v8 = vadd.f32 %v844_v16, %v826_v51 }
 0x176   : > { %v837_v39 = vpop.f32.mrf.mxu0 }
 0x178   : > { %v839_v51 = vpop.f32.mrf.mxu0 }
 0x17a   : > { %v1417_v26 = vpop.eup %1416 }
 0x17b   : > { %v1419_v47 = vpop.eup %1418  ;;  %v616_v35 = vadd.f32 1.0, %v1417_v26  ;;  %v881_v26 = vmul.f32 %v1958_v1, %v1904_v5 }
 0x17c   : > { %v617_v62 = vadd.f32 1.0, %v1419_v47  ;;  %v828_v47 = vadd.f32 %v827_v11, %v1917_v14  ;;  %v916_v14 = vsub.f32 %v908_v30, %v852_v8  ;;  %v840_v30 = vadd.f32 %v839_v51, %v1937_v33 }
 0x17d   : > { %1420 = vrcp.f32 %v616_v35  ;;  %v845_v35 = vmul.f32 %v804_v9, %v1904_v5 }
 0x17e   : > { %1422 = vrcp.f32 %v617_v62  ;;  %v909_v62 = vadd.f32 %v894_v37, %v881_v26 }
 0x17f   : > { %v853_v21 = vadd.f32 %v845_v35, %v828_v47 }
 0x181   : > { %v917_v1 = vsub.f32 %v909_v62, %v853_v21  ;;  %v2053_v62 = vpop.f32.mrf.mxu1 }
 0x18a   : > { %v1421_v58 = vpop.eup %1420 }
 0x18b   : > { %v1423_v43 = vpop.eup %1422  ;;  %v2039_v4 = vrot.slane %v1421_v58, %v1989_v24  ;;  %v838_v58 = vadd.f32 %v837_v39, %v1937_v33  ;;  %v885_v39 = vmul.f32 %v1977_v61, %v1954_v56 }
 0x18c   : > { %v2044_v5 = vrot.slane %v1423_v43, %v1989_v24  ;;  %v459_v11 = vpop.xlane.xlu1 %458 }
 0x18d   : > { %v932_v12 = vmul.f32 %v2039_v4, %v916_v14  ;;  %v467_v9 = vmul.f32 0.00390625, %v459_v11 }
 0x18e   : > { %v933_v37 = vmul.f32 %v2044_v5, %v917_v1 }
 0x18f   : > { %v940_v52 = vadd.f32 %v932_v12, %v852_v8  ;;  %v475_v16 = vadd.f32 1e-05, %v467_v9  ;;  %v884_v8 = vmul.f32 %v1977_v61, %v1951_v55  ;;  %v2066_v9 = vpop.f32.mrf.mxu1 }
 0x190   : > { %v941_v26 = vadd.f32 %v933_v37, %v853_v21  ;;  %v682_v47 = vpop.permute.xlu1 %681 }
 0x191   : > { %948 = vst [vmem:[%s2049_s21 + $0x10] sm:$0xff] %v940_v52  ;;  %1424 = vrsqrt.f32 %v475_v16  ;;  %v814_v43 = vadd.f32 %v813_v15, %v682_v47  ;;  %v816_v35 = vadd.f32 %v815_v50, %v682_v47  ;;  %v912_v50 = vadd.f32 %v2007_v19, %v884_v8  ;;  %v1067_v61 = vpop.f32.mrf.mxu1 }
 0x192   : > { %949 = vst [vmem:[%s2049_s21 + $0x18] sm:$0xff] %v941_v26  ;;  %v913_v15 = vadd.f32 %v2007_v19, %v885_v39 }
 0x193   : > { %v848_v21 = vmul.f32 %v814_v43, %v1951_v55  ;;  %v849_v14 = vmul.f32 %v816_v35, %v1954_v56  ;;  %v1069_v35 = vpop.f32.mrf.mxu1 }
 0x194   : > { %v2062_v1 = vpop.permute.xlu1 %686 }
 0x195   : > { %v856_v11 = vadd.f32 %v848_v21, %v838_v58  ;;  %v857_v12 = vadd.f32 %v849_v14, %v840_v30  ;;  %v1044_v58 = vadd.f32 %v1892_v38, %v682_v47  ;;  %v1046_v30 = vadd.f32 %v1894_v53, %v682_v47 }
 0x196   : > { %v1068_v21 = vadd.f32 %v1067_v61, %v1937_v33  ;;  %v1070_v14 = vadd.f32 %v1069_v35, %v1937_v33  ;;  %v1134_v33 = vpop.permute.xlu0 %1133 }
 0x197   : > { %v920_v37 = vsub.f32 %v912_v50, %v856_v11  ;;  %v921_v51 = vsub.f32 %v913_v15, %v857_v12 }
 0x198   : > { %v2068_v52 = vpop.permute.xlu1 %696 }
 0x199   : > { %v936_v55 = vmul.f32 %v2039_v4, %v920_v37  ;;  %v937_v56 = vmul.f32 %v2044_v5, %v921_v51 }
 0x19b   : > { %v944_v16 = vadd.f32 %v936_v55, %v856_v11  ;;  %v945_v26 = vadd.f32 %v937_v56, %v857_v12 }
 0x19c   : > { %v861_v43 = vpop.permute.xlu1 %860 }
 0x19d   : > { %952 = vst [vmem:[%s2049_s21 + $0x30] sm:$0xff] %v944_v16  ;;  %953 = vst [vmem:[%s2049_s21 + $0x38] sm:$0xff] %v945_v26  ;;  %v796_v26 = vadd.f32 %v1939_v34, %v1935_v32  ;;  %v591_v34 = vrot.slane %v1839_v42, %v1989_v24  ;;  %v832_v42 = vadd.f32 %v2023_v41, %v2068_v52 }
 0x19e   : > { %v1425_v19 = vpop.eup %1424 }
 0x19f   : > { %v498_v8 = vmul.f32 %v1425_v19, %v1854_v57  ;;  %v499_v39 = vmul.f32 %v1425_v19, %v1857_v60 }
 0x1a0   : > { %v871_v50 = vpop.permute.xlu1 %870 }
 0x1a1   : > { %v538_v15 = vmul.f32 %v1915_v20, %v498_v8  ;;  %v1078_v11 = vmul.f32 %v1044_v58, %v498_v8  ;;  %v539_v12 = vmul.f32 %v1915_v20, %v499_v39  ;;  %v1079_v37 = vmul.f32 %v1046_v30, %v499_v39 }
 0x1a2   : > { %v1114_v51 = vmul.f32 %v1992_v0, %v498_v8  ;;  %v1115_v38 = vmul.f32 %v1992_v0, %v499_v39  ;;  %v820_v58 = vadd.f32 %v2017_v59, %v2062_v1  ;;  %v822_v30 = vadd.f32 %v2019_v49, %v2062_v1 }
 0x1a3   : > { %v560_v53 = vadd.f32 %v1971_v46, %v538_v15  ;;  %v2085_v57 = vadd.f32 %v1078_v11, %v1068_v21  ;;  %v569_v60 = vadd.f32 %v1973_v48, %v539_v12  ;;  %v2088_v47 = vadd.f32 %v1079_v37, %v1070_v14 }
 0x1a4   : > { %v2090_v55 = vadd.f32 %v1134_v33, %v1114_v51  ;;  %v2092_v56 = vadd.f32 %v1134_v33, %v1115_v38  ;;  %v1091_v61 = vpop.permute.xlu1 %1090  ;;  %v798_v46 = vadd.f32 %v1960_v31, %v1935_v32  ;;  %v808_v39 = vadd.f32 %v2000_v25, %v2035_v54 }
 0x1a5   : > { %v561_v20 = vrot.slane %v560_v53, 4  ;;  %v570_v16 = vrot.slane %v569_v60, 4  ;;  %v810_v21 = vadd.f32 %v2005_v13, %v2035_v54  ;;  %v842_v14 = vmul.f32 %v796_v26, %v1907_v6 }
 0x1a6   : > { %v1150_v0 = vsub.f32 %v2090_v55, %v2085_v57  ;;  %v1151_v48 = vsub.f32 %v2092_v56, %v2088_v47  ;;  %v843_v59 = vmul.f32 %v798_v46, %v1921_v22  ;;  %v878_v49 = vmul.f32 %v861_v43, %v1907_v6 }
 0x1a7   : > { %v562_v35 = vadd.f32 %v561_v20, %v560_v53  ;;  %v571_v19 = vadd.f32 %v570_v16, %v569_v60  ;;  %v879_v12 = vmul.f32 %v861_v43, %v1921_v22  ;;  %v834_v37 = vadd.f32 %v2033_v36, %v2068_v52 }
 0x1a8   : > { %v2106_v8 = vpop.permute.xlu1 %1100  ;;  %v850_v51 = vadd.f32 %v842_v14, %v820_v58  ;;  %v851_v38 = vadd.f32 %v843_v59, %v822_v30  ;;  %v1050_v20 = vadd.f32 %v1896_v63, %v2062_v1  ;;  %v1052_v6 = vadd.f32 %v1898_v2, %v2062_v1 }
 0x1a9   : > { %v563_v32 = vrot.slane %v562_v35, 2  ;;  %v572_v31 = vrot.slane %v571_v19, 2  ;;  %v846_v22 = vmul.f32 %v808_v39, %v1929_v27  ;;  %v847_v41 = vmul.f32 %v810_v21, %v1932_v28 }
 0x1aa   : > { %v882_v46 = vmul.f32 %v871_v50, %v1929_v27  ;;  %v1109_v39 = vmul.f32 %v1091_v61, %v1913_v18 }
 0x1ab   : > { %v564_v15 = vadd.f32 %v563_v32, %v562_v35  ;;  %v573_v11 = vadd.f32 %v572_v31, %v571_v19  ;;  %v883_v35 = vmul.f32 %v871_v50, %v1932_v28  ;;  %v854_v58 = vadd.f32 %v846_v22, %v832_v42 }
 0x1ac   : > { %v889_v25 = vpop.permute.xlu1 %888  ;;  %v855_v30 = vadd.f32 %v847_v41, %v834_v37  ;;  %v1108_v31 = vmul.f32 %v1091_v61, %v1910_v10  ;;  %v1081_v10 = vadd.f32 %v1998_v17, %v1052_v6  ;;  %v1038_v17 = vadd.f32 %v1888_v23, %v2035_v54  ;;  %v2252_v6 = vld [vmem:[#allocation5_spill] sm:$0xff] }
 0x1ad   : > { %v565_v13 = vrot.slane %v564_v15, 1  ;;  %v574_v53 = vrot.slane %v573_v11, 1  ;;  %v906_v60 = vadd.f32 %v889_v25, %v878_v49  ;;  %v907_v33 = vadd.f32 %v889_v25, %v879_v12 }
 0x1ae   : > { %v1113_v22 = vmul.f32 %v2106_v8, %v2252_v6  ;;  %v1076_v23 = vmul.f32 %v1038_v17, %v1945_v45 }
 0x1af   : > { %v566_v43 = vadd.f32 %v565_v13, %v564_v15  ;;  %v575_v16 = vadd.f32 %v574_v53, %v573_v11  ;;  %v914_v36 = vsub.f32 %v906_v60, %v850_v51  ;;  %v915_v26 = vsub.f32 %v907_v33, %v851_v38 }
 0x1b0   : > { %v899_v19 = vpop.permute.xlu1 %898  ;;  %v1080_v11 = vadd.f32 %v1995_v7, %v1050_v20  ;;  %v1112_v33 = vmul.f32 %v2106_v8, %v1945_v45  ;;  %v1064_v20 = vadd.f32 %v2066_v9, %v2068_v52  ;;  %v2253_v9 = vsub.f32 %v2009_v40, %v1986_v3 }
 0x1b1   : > { %v602_v32 = vadd.f32 %v591_v34, %v566_v43  ;;  %v603_v63 = vadd.f32 %v1845_v44, %v575_v16  ;;  %v930_v2 = vmul.f32 %v2039_v4, %v914_v36  ;;  %v931_v1 = vmul.f32 %v2044_v5, %v915_v26 }
 0x1b2   : > { %v910_v21 = vadd.f32 %v899_v19, %v882_v46  ;;  %v911_v27 = vadd.f32 %v899_v19, %v883_v35 }
 0x1b3   : > { %v1316_v14 = vmul.f32 -1.442695, %v602_v32  ;;  %v1317_v28 = vmul.f32 -1.442695, %v603_v63  ;;  %v938_v50 = vadd.f32 %v930_v2, %v850_v51  ;;  %v939_v59 = vadd.f32 %v931_v1, %v851_v38  ;;  %v2255_v32 = vld [vmem:[#allocation6_spill] sm:$0xff] }
 0x1b4   : > { %v918_v15 = vsub.f32 %v910_v21, %v854_v58  ;;  %v919_v34 = vsub.f32 %v911_v27, %v855_v30  ;;  %v1119_v44 = vpop.permute.xlu1 %1118 }
 0x1b5   : > { %1426 = vpow2.f32 %v1316_v14  ;;  %946 = vst [vmem:[%s2049_s21] sm:$0xff] %v938_v50  ;;  %947 = vst [vmem:[%s2049_s21 + $0x8] sm:$0xff] %v939_v59  ;;  %v1136_v49 = vadd.f32 %v1119_v44, %v1108_v31  ;;  %v1137_v18 = vadd.f32 %v1119_v44, %v1109_v39 }
 0x1b6   : > { %1428 = vpow2.f32 %v1317_v28  ;;  %v934_v61 = vmul.f32 %v2039_v4, %v918_v15  ;;  %v935_v12 = vmul.f32 %v2044_v5, %v919_v34  ;;  %v1040_v4 = vadd.f32 %v1890_v29, %v2035_v54 }
 0x1b7   : > { %v1144_v42 = vsub.f32 %v1136_v49, %v1080_v11  ;;  %v1145_v37 = vsub.f32 %v1137_v18, %v1081_v10  ;;  %v1062_v5 = vadd.f32 %v2053_v62, %v2068_v52 }
 0x1b8   : > { %v942_v25 = vadd.f32 %v934_v61, %v854_v58  ;;  %v943_v51 = vadd.f32 %v935_v12, %v855_v30  ;;  %v1129_v60 = vpop.permute.xlu1 %1128  ;;  %v1077_v29 = vmul.f32 %v1040_v4, %v2252_v6  ;;  %v2254_v30 = vld [vmem:[#allocation7_spill] sm:$0xff] }
 0x1b9   : > { %v1140_v41 = vadd.f32 %v1129_v60, %v1112_v33  ;;  %v1141_v54 = vadd.f32 %v1129_v60, %v1113_v22  ;;  %v1084_v43 = vadd.f32 %v1076_v23, %v1062_v5  ;;  %v2256_v63 = vsub.f32 %v2254_v30, %v2255_v32 }
 0x1ba   : > { %950 = vst [vmem:[%s2049_s21 + $0x20] sm:$0xff] %v942_v25  ;;  %951 = vst [vmem:[%s2049_s21 + $0x28] sm:$0xff] %v943_v51  ;;  %v1085_v62 = vadd.f32 %v1077_v29, %v1064_v20 }
 0x1bb   : > { %v1148_v46 = vsub.f32 %v1140_v41, %v1084_v43 }
 0x1bc   : > { %v1149_v19 = vsub.f32 %v1141_v54, %v1085_v62 }
 0x1c2   : > { %v1427_v38 = vpop.eup %1426 }
 0x1c3   : > { %v1429_v7 = vpop.eup %1428  ;;  %v618_v13 = vadd.f32 1.0, %v1427_v38 }
 0x1c4   : > { %v619_v53 = vadd.f32 1.0, %v1429_v7 }
 0x1c5   : > { %1430 = vrcp.f32 %v618_v13 }
 0x1c6   : > { %1432 = vrcp.f32 %v619_v53 }
 0x1d2   : > { %v1431_v16 = vpop.eup %1430 }
 0x1d3   : > { %v1433_v36 = vpop.eup %1432  ;;  %v1155_v26 = vrot.slane %v1431_v16, %v1989_v24 }
 0x1d4   : > { %v1159_v35 = vrot.slane %v1433_v36, %v1989_v24 }
 0x1d5   : > { %v1162_v45 = vmul.f32 %v1155_v26, %v2253_v9  ;;  %v1166_v52 = vmul.f32 %v1155_v26, %v1150_v0  ;;  %v1160_v8 = vmul.f32 %v1155_v26, %v1144_v42  ;;  %v1164_v58 = vmul.f32 %v1155_v26, %v1148_v46 }
 0x1d6   : > { %v1163_v2 = vmul.f32 %v1159_v35, %v2256_v63  ;;  %v1167_v24 = vmul.f32 %v1159_v35, %v1151_v48  ;;  %v1161_v40 = vmul.f32 %v1159_v35, %v1145_v37  ;;  %v1165_v1 = vmul.f32 %v1159_v35, %v1149_v19 }
 0x1d7   : > { %v1170_v55 = vadd.f32 %v1162_v45, %v1986_v3  ;;  %v1174_v0 = vadd.f32 %v1166_v52, %v2085_v57  ;;  %v1168_v31 = vadd.f32 %v1160_v8, %v1080_v11  ;;  %v1172_v39 = vadd.f32 %v1164_v58, %v1084_v43 }
 0x1d8   : > { %v1171_v56 = vadd.f32 %v1163_v2, %v2255_v32  ;;  %v1175_v3 = vadd.f32 %v1167_v24, %v2088_v47  ;;  %v1169_v48 = vadd.f32 %v1161_v40, %v1081_v10  ;;  %v1173_v57 = vadd.f32 %v1165_v1, %v1085_v62 }
 0x1d9   : > { %1340 = vst [vmem:[%s2049_s21 + $0x50] sm:$0xff] %v1170_v55  ;;  %1344 = vst [vmem:[%s2049_s21 + $0x70] sm:$0xff] %v1174_v0 }
 0x1da   : > { %1338 = vst [vmem:[%s2049_s21 + $0x40] sm:$0xff] %v1168_v31  ;;  %1342 = vst [vmem:[%s2049_s21 + $0x60] sm:$0xff] %v1172_v39 }
 0x1db   : > { %1341 = vst [vmem:[%s2049_s21 + $0x58] sm:$0xff] %v1171_v56  ;;  %1345 = vst [vmem:[%s2049_s21 + $0x78] sm:$0xff] %v1175_v3 }
 0x1dc   : > { %1339 = vst [vmem:[%s2049_s21 + $0x48] sm:$0xff] %v1169_v48  ;;  %1343 = vst [vmem:[%s2049_s21 + $0x68] sm:$0xff] %v1173_v57 }
 0x1dd   : > { %1447 = shalt.err (!%p1444_p3)
}
 0x1de   : > { %s1448_s17 = scalar_lea.hbm %s2178_s29, 2048  ;;  %s1452_s20 = scalar_lea.hbm %s2241_s7, 4096 }
 0x1df   : > { %p1449_p4 = scmp.ne.s32.totalorder %s2178_s29, %s1448_s17  ;;  %p1453_p9 = scmp.lt.s32.totalorder %s2178_s29, %s2241_s7 }
 0x1e0   : > { %p1454_p10 = scmp.lt.s32.totalorder %s1452_s20, %s1448_s17 }
 0x1e1   : > { %p1450_p7 = pnand %p1449_p4, %p1579_p5 }
 0x1e2   : > { %p1455_p11 = por %p1454_p10, %p1453_p9 }
 0x1e3   : > { %p1451_p8 = pneg %p1450_p7 }
 0x1e5   : > { %p1456_p12 = pnand %p1455_p11, %p1451_p8 }
 0x1e7   : > { %1459 = shalt.err (!%p1456_p12)
}
 0x1e8   : > { %s1499_s28 = smov 256   ;;  %s1500_s14 = smov 16  }
 0x1e9   : > { %1357 = dma.vmem_to_hbm [thread:$0]  (%p1579_p5), %s2180_s23, 2048, %s2178_s29, %s2194_s8, %s1499_s28, %s1499_s28, %s1500_s14  }
 0x1ea PF: > { %p1363_p13 = scmp.ge.s32.totalorder %s1494_s27, 2  ;;  %s1215_s13 = sand.u32 1, %s1482_s24  }
 0x1eb   : > { %s1216_s9 = scalar_lea.sflag [#allocation3], %s1215_s13 }
 0x1ec   : > { %p1360_p0 = pnand %p1363_p13, %p1583_p6 }
 0x1ee   : > { %p1361_p1 = pneg %p1360_p0 }
 0x1f0   : > { %1477 = dma.done.wait (%p1361_p1), %s1216_s9, 2048  }
 0x1f1   : > { %1479 = vsyncadd (%p1361_p1), %s1216_s9, 4294965248  ;;  %p17_p2 = scmp.ge.s32.totalorder %s1566_s30, 4   ;;  %s2257_s24 = smov %s1486_s25 }
 0x1f2   : > { %s2258_s25 = smov %s1490_s26  ;;  %s2259_s26 = smov %s1577_s10 }
 0x1f3   : > { %s2260_s27 = smov %s1566_s30  ;;  %19 = sbr.rel (!%p17_p2) target bundleno = 3 (0x3), region = 94 }
 0x1f8   :  { %1221 = vsyncpa [#allocation3], 1 }
 0x1f9   :  { %1223 = vsyncpa [#allocation3 + $0x1], 1 }

</bundles_post_ra>
